<compile_context>
chip_gen: v6e
topology: v6e:2x2x1
jax: 0.10.0
libtpu: 0.0.40
codegen_flags: <defaults>
</compile_context>

<pallas_src>
import jax
import jax.numpy as jnp
from jax import lax
from jax.experimental import pallas as pl
from jax.experimental.pallas import tpu as pltpu

LANE = 128
SUBLANE = 8


def _round_up(n, m):
    return ((n + m - 1) // m) * m


def mlp_kernel(x_ref, w1_ref, b1_ref, w2_ref, b2_ref, w3t_ref, b3t_ref, o_ref):
    # x arrives f32 straight from HBM; cast to bf16 on the VPU (kernel is
    # DMA-bound, so this is free) instead of in a separate wrapper pass.
    x = x_ref[...].astype(jnp.bfloat16)

    # Layer 1: bf16 MXU matmul, f32 accumulation; bias + ReLU in f32 (v5e-safe).
    h1 = jnp.dot(x, w1_ref[...], preferred_element_type=jnp.float32)
    h1 = jnp.maximum(h1 + b1_ref[...], 0.0)

    # Layer 2: Linear + ReLU.
    h2 = jnp.dot(h1.astype(jnp.bfloat16), w2_ref[...],
                 preferred_element_type=jnp.float32)
    h2 = jnp.maximum(h2 + b2_ref[...], 0.0)

    # Layer 3 computed transposed:  out_t[o, b] = sum_h w3t[o, h] * h2[b, h]
    # Contraction on both last dims is the MXU "A @ B^T" pattern (no explicit
    # transpose materialized); the store target is a compact (out_pad, tb)
    # lane-dense block instead of a (tb, 128)-padded row per sample.
    out_t = lax.dot_general(
        w3t_ref[...], h2.astype(jnp.bfloat16),
        dimension_numbers=(((1,), (1,)), ((), ())),
        preferred_element_type=jnp.float32)
    o_ref[...] = (out_t + b3t_ref[...]).astype(o_ref.dtype)


def amplitude_regressor(x, params, *, block_batch=2048):
    """x: (B, input_dim) float32. params: w1,b1,w2,b2,w3,b3 (weights (in, out))."""
    w1, b1, w2, b2, w3, b3 = (params[k] for k in ("w1", "b1", "w2", "b2", "w3", "b3"))
    B, input_dim = x.shape
    hidden_dim = w1.shape[1]
    out_dim = w3.shape[1]
    out_pad = _round_up(out_dim, SUBLANE)     # 4 -> 8 sublanes, compact transposed out

    # Batch tile: multiple of 128 so the transposed (out_pad, tb) store is
    # lane-dense; pick it to minimize padding instead of a fixed cap.
    n_tiles = max(1, pl.cdiv(B, block_batch))
    if B >= 2 * LANE:
        n_tiles = max(n_tiles, 2)             # v7x megacore: give both TCs a grid step
    tb = _round_up(pl.cdiv(B, n_tiles), LANE)
    grid_n = pl.cdiv(B, tb)
    b_pad = grid_n * tb

    # Pad the batch only when needed and keep f32 — no wrapper dtype pass over x.
    x_p = x if b_pad == B else jnp.pad(x, ((0, b_pad - B), (0, 0)))

    w1_b = w1.astype(jnp.bfloat16)
    w2_b = w2.astype(jnp.bfloat16)
    # Layer-3 weight stored transposed + sublane-padded: (out_pad, hidden).
    w3t_b = jnp.zeros((out_pad, hidden_dim), jnp.bfloat16).at[:out_dim, :].set(
        w3.T.astype(jnp.bfloat16))
    b3t = jnp.zeros((out_pad, 1), jnp.float32).at[:out_dim, 0].set(b3.reshape(-1))

    # Weights/biases: constant block index -> fetched once, VMEM-resident.
    resident = lambda a: pl.BlockSpec(a.shape, lambda i: (0, 0))

    flops = 2 * b_pad * (input_dim * hidden_dim
                         + hidden_dim * hidden_dim
                         + hidden_dim * out_pad)
    bytes_accessed = (x_p.size * 4 + b_pad * out_pad * 4
                      + (w1_b.size + w2_b.size + w3t_b.size) * 2
                      + (b1.size + b2.size + b3t.size) * 4)

    out_t = pl.pallas_call(
        mlp_kernel,
        out_shape=jax.ShapeDtypeStruct((out_pad, b_pad), jnp.float32),
        grid=(grid_n,),
        in_specs=[
            pl.BlockSpec((tb, input_dim), lambda i: (i, 0)),   # x tiled over batch
            resident(w1_b), resident(b1),
            resident(w2_b), resident(b2),
            resident(w3t_b), resident(b3t),
        ],
        out_specs=pl.BlockSpec((out_pad, tb), lambda i: (0, i)),
        compiler_params=pltpu.CompilerParams(
            dimension_semantics=("parallel",)),
        cost_estimate=pl.CostEstimate(
            flops=flops, transcendentals=0, bytes_accessed=bytes_accessed),
    )(x_p, w1_b, b1, w2_b, b2, w3t_b, b3t)

    # Compact (out_pad, b_pad) -> (B, out_dim); only ~32 B/row is re-read here.
    return out_t[:out_dim, :B].T


def init_params(key, input_dim, hidden_dim, output_dim):
    """PyTorch-style uniform init; weights stored (in, out), biases (1, out)."""
    ks = jax.random.split(key, 6)

    def linear(kw, kb, fan_in, fan_out):
        bound = 1.0 / jnp.sqrt(fan_in)
        w = jax.random.uniform(kw, (fan_in, fan_out), jnp.float32, -bound, bound)
        b = jax.random.uniform(kb, (1, fan_out), jnp.float32, -bound, bound)
        return w, b

    w1, b1 = linear(ks[0], ks[1], input_dim, hidden_dim)
    w2, b2 = linear(ks[2], ks[3], hidden_dim, hidden_dim)
    w3, b3 = linear(ks[4], ks[5], hidden_dim, output_dim)
    return {"w1": w1, "b1": b1, "w2": w2, "b2": b2, "w3": w3, "b3": b3}


def reference_f32(x, p):
    h1 = jnp.maximum(x @ p["w1"] + p["b1"], 0.0)
    h2 = jnp.maximum(h1 @ p["w2"] + p["b2"], 0.0)
    return h2 @ p["w3"] + p["b3"]


if __name__ == "__main__":
    key = jax.random.PRNGKey(0)
    k_x, k_p = jax.random.split(key)

    # Small shapes consistent with the module (hidden_dim uses the 256 default).
    batch, input_dim, hidden_dim, output_dim = 8, 32, 256, 4
    x = jax.random.normal(k_x, (batch, input_dim), jnp.float32)
    params = init_params(k_p, input_dim, hidden_dim, output_dim)

    out = amplitude_regressor(x, params)
    out = jax.block_until_ready(out)

    ref = reference_f32(x, params)
    assert out.shape == (batch, output_dim)
    # bf16 matmul inputs with f32 accumulation -> loosened tolerance vs f32 ref.
    assert jnp.allclose(out, ref, atol=3e-2, rtol=3e-2), (
        float(jnp.max(jnp.abs(out - ref))))

    print("KERNEL_OK")
</pallas_src>

<mosaic_0001>
module attributes {stable_mosaic.version = 11 : i64} {
  func.func @mlp_kernel(%arg0: i32, %arg1: memref<128x32xf32, #tpu.memory_space<vmem>>, %arg2: memref<32x256xbf16, #tpu.memory_space<vmem>>, %arg3: memref<1x256xf32, #tpu.memory_space<vmem>>, %arg4: memref<256x256xbf16, #tpu.memory_space<vmem>>, %arg5: memref<1x256xf32, #tpu.memory_space<vmem>>, %arg6: memref<8x256xbf16, #tpu.memory_space<vmem>>, %arg7: memref<8x1xf32, #tpu.memory_space<vmem>>, %arg8: memref<8x128xf32, #tpu.memory_space<vmem>>) attributes {dimension_semantics = [#tpu.dimension_semantics<parallel>], iteration_bounds = array<i64: 1>, scalar_prefetch = 0 : i64, scratch_operands = 0 : i64, tpu.core_type = #tpu.core_type<tc>, window_params = [{transform_indices = @transform_0, window_bounds = array<i64: 128, 32>}, {pipeline_mode = #tpu.pipeline_mode<synchronous>, transform_indices = @transform_1, window_bounds = array<i64: 32, 256>}, {pipeline_mode = #tpu.pipeline_mode<synchronous>, transform_indices = @transform_2, window_bounds = array<i64: 1, 256>}, {pipeline_mode = #tpu.pipeline_mode<synchronous>, transform_indices = @transform_3, window_bounds = array<i64: 256, 256>}, {pipeline_mode = #tpu.pipeline_mode<synchronous>, transform_indices = @transform_4, window_bounds = array<i64: 1, 256>}, {pipeline_mode = #tpu.pipeline_mode<synchronous>, transform_indices = @transform_5, window_bounds = array<i64: 8, 256>}, {pipeline_mode = #tpu.pipeline_mode<synchronous>, transform_indices = @transform_6, window_bounds = array<i64: 8, 1>}, {transform_indices = @transform_7, window_bounds = array<i64: 8, 128>}]} {
    %c0 = arith.constant 0 : index
    %c0_0 = arith.constant 0 : index
    %0 = vector.load %arg1[%c0, %c0_0] : memref<128x32xf32, #tpu.memory_space<vmem>>, vector<128x32xf32>
    %1 = arith.truncf %0 : vector<128x32xf32> to vector<128x32xbf16>
    %c0_1 = arith.constant 0 : index
    %c0_2 = arith.constant 0 : index
    %2 = vector.load %arg2[%c0_1, %c0_2] : memref<32x256xbf16, #tpu.memory_space<vmem>>, vector<32x256xbf16>
    %cst = arith.constant dense<0.000000e+00> : vector<128x256xf32>
    %3 = tpu.matmul %1, %2, %cst {dimension_numbers = #tpu.dot_dimension_numbers<[1], [0], [0], [1], [0, 0, 1, 1], [], []>} : vector<128x32xbf16>, vector<32x256xbf16>, vector<128x256xf32> -> vector<128x256xf32>
    %c0_3 = arith.constant 0 : index
    %c0_4 = arith.constant 0 : index
    %4 = vector.load %arg3[%c0_3, %c0_4] : memref<1x256xf32, #tpu.memory_space<vmem>>, vector<1x256xf32>
    %5 = vector.broadcast %4 : vector<1x256xf32> to vector<128x256xf32>
    %6 = arith.addf %3, %5 : vector<128x256xf32>
    %cst_5 = arith.constant 0.000000e+00 : f32
    %7 = vector.broadcast %cst_5 : f32 to vector<128x256xf32>
    %8 = arith.maximumf %6, %7 : vector<128x256xf32>
    %9 = arith.truncf %8 : vector<128x256xf32> to vector<128x256xbf16>
    %c0_6 = arith.constant 0 : index
    %c0_7 = arith.constant 0 : index
    %10 = vector.load %arg4[%c0_6, %c0_7] : memref<256x256xbf16, #tpu.memory_space<vmem>>, vector<256x256xbf16>
    %cst_8 = arith.constant dense<0.000000e+00> : vector<128x256xf32>
    %11 = tpu.matmul %9, %10, %cst_8 {dimension_numbers = #tpu.dot_dimension_numbers<[1], [0], [0], [1], [0, 0, 1, 1], [], []>} : vector<128x256xbf16>, vector<256x256xbf16>, vector<128x256xf32> -> vector<128x256xf32>
    %c0_9 = arith.constant 0 : index
    %c0_10 = arith.constant 0 : index
    %12 = vector.load %arg5[%c0_9, %c0_10] : memref<1x256xf32, #tpu.memory_space<vmem>>, vector<1x256xf32>
    %13 = vector.broadcast %12 : vector<1x256xf32> to vector<128x256xf32>
    %14 = arith.addf %11, %13 : vector<128x256xf32>
    %cst_11 = arith.constant 0.000000e+00 : f32
    %15 = vector.broadcast %cst_11 : f32 to vector<128x256xf32>
    %16 = arith.maximumf %14, %15 : vector<128x256xf32>
    %c0_12 = arith.constant 0 : index
    %c0_13 = arith.constant 0 : index
    %17 = vector.load %arg6[%c0_12, %c0_13] : memref<8x256xbf16, #tpu.memory_space<vmem>>, vector<8x256xbf16>
    %18 = arith.truncf %16 : vector<128x256xf32> to vector<128x256xbf16>
    %cst_14 = arith.constant dense<0.000000e+00> : vector<8x128xf32>
    %19 = tpu.matmul %17, %18, %cst_14 {dimension_numbers = #tpu.dot_dimension_numbers<[1], [1], [0], [0], [0, 0, 1, 0], [], []>} : vector<8x256xbf16>, vector<128x256xbf16>, vector<8x128xf32> -> vector<8x128xf32>
    %c0_15 = arith.constant 0 : index
    %c0_16 = arith.constant 0 : index
    %20 = vector.load %arg7[%c0_15, %c0_16] : memref<8x1xf32, #tpu.memory_space<vmem>>, vector<8x1xf32>
    %21 = vector.broadcast %20 : vector<8x1xf32> to vector<8x128xf32>
    %22 = arith.addf %19, %21 : vector<8x128xf32>
    %c0_17 = arith.constant 0 : index
    %c0_18 = arith.constant 0 : index
    %23 = vector.load %arg8[%c0_17, %c0_18] : memref<8x128xf32, #tpu.memory_space<vmem>>, vector<8x128xf32>
    tpu.vector_store %arg8[%c0_17, %c0_18], %22 {strides = array<i32>} : memref<8x128xf32, #tpu.memory_space<vmem>>, vector<8x128xf32>,
    return
  }
  func.func @transform_0(%arg0: i32) -> (i32, i32) {
    %c0_i32 = arith.constant 0 : i32
    %c0_i32_0 = arith.constant 0 : i32
    return %arg0, %c0_i32 : i32, i32
  }
  func.func @transform_1(%arg0: i32) -> (i32, i32) {
    %c0_i32 = arith.constant 0 : i32
    %c0_i32_0 = arith.constant 0 : i32
    %c0_i32_1 = arith.constant 0 : i32
    return %c0_i32, %c0_i32_0 : i32, i32
  }
  func.func @transform_2(%arg0: i32) -> (i32, i32) {
    %c0_i32 = arith.constant 0 : i32
    %c0_i32_0 = arith.constant 0 : i32
    %c0_i32_1 = arith.constant 0 : i32
    return %c0_i32, %c0_i32_0 : i32, i32
  }
  func.func @transform_3(%arg0: i32) -> (i32, i32) {
    %c0_i32 = arith.constant 0 : i32
    %c0_i32_0 = arith.constant 0 : i32
    %c0_i32_1 = arith.constant 0 : i32
    return %c0_i32, %c0_i32_0 : i32, i32
  }
  func.func @transform_4(%arg0: i32) -> (i32, i32) {
    %c0_i32 = arith.constant 0 : i32
    %c0_i32_0 = arith.constant 0 : i32
    %c0_i32_1 = arith.constant 0 : i32
    return %c0_i32, %c0_i32_0 : i32, i32
  }
  func.func @transform_5(%arg0: i32) -> (i32, i32) {
    %c0_i32 = arith.constant 0 : i32
    %c0_i32_0 = arith.constant 0 : i32
    %c0_i32_1 = arith.constant 0 : i32
    return %c0_i32, %c0_i32_0 : i32, i32
  }
  func.func @transform_6(%arg0: i32) -> (i32, i32) {
    %c0_i32 = arith.constant 0 : i32
    %c0_i32_0 = arith.constant 0 : i32
    %c0_i32_1 = arith.constant 0 : i32
    return %c0_i32, %c0_i32_0 : i32, i32
  }
  func.func @transform_7(%arg0: i32) -> (i32, i32) {
    %c0_i32 = arith.constant 0 : i32
    %c0_i32_0 = arith.constant 0 : i32
    return %c0_i32, %arg0 : i32, i32
  }
}

</mosaic_0001>

<bundles_post_ra>
// kernel: tpu_custom_call.1
= control target key start
LH: loop header
LB: loop body
LE: loop exit
PB: predicated region body
PF: predicated region fallthrough
CT: control target
= control target key end

     0   :  { %12 = vsyncpa [#allocation3], 0  ;;  %s1129_s0 = inlined_call_operand.vmem [shape: f32[128,32], index: 0, kind: input, shape index: {}]   ;;  %s1130_s1 = inlined_call_operand.vmem [shape: bf16[32,256], index: 1, kind: input, shape index: {}]   ;;  %s1131_s2 = inlined_call_operand.vmem [shape: f32[1,256], index: 2, kind: input, shape index: {}]   ;;  %s1132_s3 = inlined_call_operand.hbm [shape: bf16[256,256], index: 3, kind: input, shape index: {}]   ;;  %s1133_s4 = inlined_call_operand.vmem [shape: f32[1,256], index: 4, kind: input, shape index: {}]   ;;  %s1134_s5 = inlined_call_operand.vmem [shape: bf16[8,256], index: 5, kind: input, shape index: {}]   ;;  %s1135_s6 = inlined_call_operand.vmem [shape: f32[8,1], index: 6, kind: input, shape index: {}]   ;;  %s1136_s7 = inlined_call_operand.hbm [shape: f32[8,128], index: 7, kind: output, shape index: {}]  }
   0x1   :  { %13 = vsyncpa [#allocation4], 0  ;;  %s875_s24 = smov [#allocation2]  }
   0x2   :  { %s25_s25 = sshll.u32 %s875_s24, 4  ;;  %s26_s25 = int_to_ptr.vmem [resolvable:$true] %s25_s25 }
   0x3   :  { %s839_s26 = scalar_lea.vmem %s26_s25, 4096  ;;  %p844_p1 = scmp.lt.s32.totalorder %s26_s25, %s26_s25 }
   0x4   :  { %p840_p0 = scmp.ne.s32.totalorder %s26_s25, %s839_s26  ;;  %p845_p2 = scmp.lt.s32.totalorder %s839_s26, %s839_s26 }
   0x6   :  { %p846_p3 = por %p845_p2, %p844_p1 }
   0x8   :  { %p847_p4 = pnand %p846_p3, %p840_p0 }
   0xa   :  { %850 = shalt.err (!%p847_p4)
}
   0xb   :  { %s876_s27 = smov 128   ;;  %s877_s28 = smov 8  }
   0xc   :  { %31 = dma.hbm_to_vmem [thread:$0]  %s1132_s3, 4096, %s26_s25, [#allocation3], %s876_s27, %s876_s27, %s877_s28  }
   0xd   :  { %871 = dma.done.wait [#allocation3], 4096  }
   0xe   :  { %872 = vsyncadd [#allocation3], 4294963200  ;;  %v878_v0 = vmov 0   ;;  %v775_v1 = vld [vmem:[%s1130_s1 + $0x14] ss:$8 sps:$4 sm:$0xff]   ;;  %v42_v5 = vld [vmem:[%s1129_s0] sm:$0xff]  ;;  %v72_v61 = vlaneseq }
   0xf   :  { %159 = vmatprep.mubr.bf16.mxu0 %v878_v0  ;;  %774 = vset.pattern.permute.xlu0 %v878_v0  ;;  %v777_v2 = vld [vmem:[%s1130_s1 + $0x10] ss:$8 sps:$4 sm:$0xff]   ;;  %v778_v3 = vld [vmem:[%s1130_s1 + $0x4] ss:$8 sps:$4 sm:$0xff]   ;;  %v780_v4 = vld [vmem:[%s1130_s1] ss:$8 sps:$4 sm:$0xff]  }
  0x10   :  { %139 = vmatprep.subr.bf16.mxu0 %v775_v1  ;;  %v43_v6 = vld [vmem:[%s1129_s0 + $0x8] sm:$0xff]  ;;  %vm102_vm0 = vcmask 261120   ;;  %v781_v8 = vld [vmem:[#allocation2 + $0x74] ss:$8 sps:$4 sm:$0xff]   ;;  %v783_v9 = vld [vmem:[#allocation2 + $0x70] ss:$8 sps:$4 sm:$0xff]  }
  0x11   :  { %140 = vmatpush1.bf16.msra.mxu0 %v777_v2  ;;  %v58_v7 = vpack.c.bf16 %v43_v6, %v42_v5  ;;  %v44_v10 = vld [vmem:[%s1129_s0 + $0x10] sm:$0xff]  ;;  %492 = vmatprep.subr.bf16.mxu1 %v781_v8  ;;  %v784_v11 = vld [vmem:[#allocation2 + $0x64] ss:$8 sps:$4 sm:$0xff]   ;;  %v45_v12 = vld [vmem:[%s1129_s0 + $0x18] sm:$0xff]  ;;  %v1000_v62 = vshrl.u32 %v72_v61, 7 }
  0x12   :  { %141 = vmatprep.subr.bf16.mxu0 %v778_v3  ;;  %493 = vmatpush1.bf16.msra.mxu1 %v783_v9  ;;  %v786_v13 = vld [vmem:[#allocation2 + $0x60] ss:$8 sps:$4 sm:$0xff]   ;;  %v787_v14 = vld [vmem:[#allocation2 + $0x54] ss:$8 sps:$4 sm:$0xff]   ;;  %v59_v15 = vpack.c.bf16 %v45_v12, %v44_v10  ;;  %v789_v16 = vld [vmem:[#allocation2 + $0x50] ss:$8 sps:$4 sm:$0xff]  }
  0x13   :  { %494 = vmatprep.subr.bf16.mxu1 %v784_v11  ;;  %v790_v17 = vld [vmem:[#allocation2 + $0x44] ss:$8 sps:$4 sm:$0xff]   ;;  %v792_v20 = vld [vmem:[#allocation2 + $0x40] ss:$8 sps:$4 sm:$0xff]   ;;  %v793_v21 = vld [vmem:[#allocation2 + $0x34] ss:$8 sps:$4 sm:$0xff]  }
  0x14   :  { %v46_v18 = vld [vmem:[%s1129_s0 + $0x20] sm:$0xff]  ;;  %v47_v19 = vld [vmem:[%s1129_s0 + $0x28] sm:$0xff]  ;;  %v795_v23 = vld [vmem:[#allocation2 + $0x30] ss:$8 sps:$4 sm:$0xff]   ;;  %v78_v63 = vsub.s32 1, %v1000_v62 }
  0x15   :  { %142 = vmatpush1.bf16.msra.mxu0 %v780_v4  ;;  %v60_v22 = vpack.c.bf16 %v47_v19, %v46_v18  ;;  %v796_v24 = vld [vmem:[#allocation2 + $0x24] ss:$8 sps:$4 sm:$0xff]   ;;  %v48_v25 = vld [vmem:[%s1129_s0 + $0x30] sm:$0xff]  ;;  %v49_v26 = vld [vmem:[%s1129_s0 + $0x38] sm:$0xff] }
  0x16   :  { %495 = vmatpush1.bf16.msra.mxu1 %v786_v13  ;;  %v798_v27 = vld [vmem:[#allocation2 + $0x20] ss:$8 sps:$4 sm:$0xff]   ;;  %v799_v28 = vld [vmem:[#allocation2 + $0x14] ss:$8 sps:$4 sm:$0xff]   ;;  %v61_v29 = vpack.c.bf16 %v49_v26, %v48_v25  ;;  %v801_v30 = vld [vmem:[#allocation2 + $0x10] ss:$8 sps:$4 sm:$0xff]  }
  0x17   :  { %496 = vmatprep.subr.bf16.mxu1 %v787_v14  ;;  %v802_v31 = vld [vmem:[#allocation2 + $0x4] ss:$8 sps:$4 sm:$0xff]   ;;  %v804_v34 = vld [vmem:[#allocation2] ss:$8 sps:$4 sm:$0xff]   ;;  %v805_v35 = vld [vmem:[#allocation2 + $0xf4] ss:$8 sps:$4 sm:$0xff]  }
  0x18   :  { %727 = vmatmul.mubr.msk.bf16.vlgmr.msra.gmra.mxu0 %vm102_vm0, %v58_v7  ;;  %v50_v32 = vld [vmem:[%s1129_s0 + $0x40] sm:$0xff]  ;;  %v51_v33 = vld [vmem:[%s1129_s0 + $0x48] sm:$0xff]  ;;  %v807_v37 = vld [vmem:[#allocation2 + $0xf0] ss:$8 sps:$4 sm:$0xff]  }
  0x19   :  { %169 = vmatprep.mubr.bf16.mxu0 %v878_v0  ;;  %v62_v36 = vpack.c.bf16 %v51_v33, %v50_v32  ;;  %v808_v38 = vld [vmem:[#allocation2 + $0xe4] ss:$8 sps:$4 sm:$0xff]   ;;  %v52_v39 = vld [vmem:[%s1129_s0 + $0x50] sm:$0xff]  ;;  %v53_v40 = vld [vmem:[%s1129_s0 + $0x58] sm:$0xff] }
  0x1a   :  { %497 = vmatpush1.bf16.msra.mxu1 %v789_v16  ;;  %v810_v41 = vld [vmem:[#allocation2 + $0xe0] ss:$8 sps:$4 sm:$0xff]   ;;  %v811_v42 = vld [vmem:[#allocation2 + $0xd4] ss:$8 sps:$4 sm:$0xff]   ;;  %v63_v43 = vpack.c.bf16 %v53_v40, %v52_v39  ;;  %v813_v44 = vld [vmem:[#allocation2 + $0xd0] ss:$8 sps:$4 sm:$0xff]  }
  0x1b   :  { %498 = vmatprep.subr.bf16.mxu1 %v790_v17  ;;  %v814_v45 = vld [vmem:[#allocation2 + $0xc4] ss:$8 sps:$4 sm:$0xff]   ;;  %v816_v48 = vld [vmem:[#allocation2 + $0xc0] ss:$8 sps:$4 sm:$0xff]   ;;  %v817_v49 = vld [vmem:[#allocation2 + $0xb4] ss:$8 sps:$4 sm:$0xff]  }
  0x1c   :  { %v54_v46 = vld [vmem:[%s1129_s0 + $0x60] sm:$0xff]  ;;  %v55_v47 = vld [vmem:[%s1129_s0 + $0x68] sm:$0xff]  ;;  %v819_v51 = vld [vmem:[#allocation2 + $0xb0] ss:$8 sps:$4 sm:$0xff]  }
  0x1d   :  { %v64_v50 = vpack.c.bf16 %v55_v47, %v54_v46  ;;  %v56_v52 = vld [vmem:[%s1129_s0 + $0x70] sm:$0xff]  ;;  %v57_v53 = vld [vmem:[%s1129_s0 + $0x78] sm:$0xff]  ;;  %v820_v55 = vld [vmem:[#allocation2 + $0xa4] ss:$8 sps:$4 sm:$0xff]  }
  0x1e   :  { %499 = vmatpush1.bf16.msra.mxu1 %v792_v20  ;;  %v65_v54 = vpack.c.bf16 %v57_v53, %v56_v52  ;;  %v822_v56 = vld [vmem:[#allocation2 + $0xa0] ss:$8 sps:$4 sm:$0xff]   ;;  %v823_v57 = vld [vmem:[#allocation2 + $0x94] ss:$8 sps:$4 sm:$0xff]   ;;  %v825_v58 = vld [vmem:[#allocation2 + $0x90] ss:$8 sps:$4 sm:$0xff]  }
  0x1f   :  { %500 = vmatprep.subr.bf16.mxu1 %v793_v21  ;;  %v826_v59 = vld [vmem:[#allocation2 + $0x84] ss:$8 sps:$4 sm:$0xff]   ;;  %v828_v60 = vld [vmem:[#allocation2 + $0x80] ss:$8 sps:$4 sm:$0xff]  }
  0x20   :  { %728 = vmatmul.mubr.msk.bf16.gmra.mxu0 %vm102_vm0, %v59_v15  ;;  %v70_v1 = vld [vmem:[%s1131_s2] sm:$0x3] }
  0x21   :  { %179 = vmatprep.mubr.bf16.mxu0 %v878_v0  ;;  %v1009_v3 = vrot.slane %v70_v1, %v78_v63 }
  0x22   :  { %501 = vmatpush1.bf16.msra.mxu1 %v795_v23 }
  0x23   :  { %502 = vmatprep.subr.bf16.mxu1 %v796_v24 }
  0x26   :  { %503 = vmatpush1.bf16.msra.mxu1 %v798_v27 }
  0x27   :  { %504 = vmatprep.subr.bf16.mxu1 %v799_v28 }
  0x28   :  { %729 = vmatmul.mubr.msk.bf16.gmra.mxu0 %vm102_vm0, %v60_v22 }
  0x29   :  { %189 = vmatprep.mubr.bf16.mxu0 %v878_v0 }
  0x2a   :  { %505 = vmatpush1.bf16.msra.mxu1 %v801_v30 }
  0x2b   :  { %506 = vmatprep.subr.bf16.mxu1 %v802_v31 }
  0x2e   :  { %507 = vmatpush1.bf16.msra.mxu1 %v804_v34 }
  0x2f   :  { %508 = vmatprep.subr.bf16.mxu1 %v805_v35 }
  0x30   :  { %730 = vmatmul.mubr.msk.bf16.gmra.mxu0 %vm102_vm0, %v61_v29 }
  0x31   :  { %199 = vmatprep.mubr.bf16.mxu0 %v878_v0 }
  0x32   :  { %509 = vmatpush2.bf16.msra.mxu1 %v807_v37 }
  0x33   :  { %510 = vmatprep.subr.bf16.mxu1 %v808_v38 }
  0x36   :  { %511 = vmatpush2.bf16.msra.mxu1 %v810_v41 }
  0x37   :  { %512 = vmatprep.subr.bf16.mxu1 %v811_v42 }
  0x38   :  { %731 = vmatmul.mubr.msk.bf16.gmra.mxu0 %vm102_vm0, %v62_v36 }
  0x39   :  { %209 = vmatprep.mubr.bf16.mxu0 %v878_v0 }
  0x3a   :  { %513 = vmatpush2.bf16.msra.mxu1 %v813_v44 }
  0x3b   :  { %514 = vmatprep.subr.bf16.mxu1 %v814_v45 }
  0x3e   :  { %515 = vmatpush2.bf16.msra.mxu1 %v816_v48 }
  0x3f   :  { %516 = vmatprep.subr.bf16.mxu1 %v817_v49 }
  0x40   :  { %732 = vmatmul.mubr.msk.bf16.gmra.mxu0 %vm102_vm0, %v63_v43 }
  0x41   :  { %219 = vmatprep.mubr.bf16.mxu0 %v878_v0 }
  0x42   :  { %517 = vmatpush2.bf16.msra.mxu1 %v819_v51 }
  0x43   :  { %518 = vmatprep.subr.bf16.mxu1 %v820_v55 }
  0x46   :  { %519 = vmatpush2.bf16.msra.mxu1 %v822_v56 }
  0x47   :  { %520 = vmatprep.subr.bf16.mxu1 %v823_v57 }
  0x48   :  { %733 = vmatmul.mubr.msk.bf16.gmra.mxu0 %vm102_vm0, %v64_v50 }
  0x49   :  { %229 = vmatprep.mubr.bf16.mxu0 %v878_v0  ;;  %v74_v0 = vsub.s32 0, %v1000_v62 }
  0x4a   :  { %521 = vmatpush2.bf16.msra.mxu1 %v825_v58 }
  0x4b   :  { %522 = vmatprep.subr.bf16.mxu1 %v826_v59  ;;  %v1013_v4 = vrot.slane %v70_v1, %v74_v0 }
  0x4e   :  { %523 = vmatpush2.bf16.msra.mxu1 %v828_v60 }
  0x50   :  { %734 = vmatmul.mubr.msk.bf16.gmra.mxu0 %vm102_vm0, %v65_v54 }
  0xd8   :  { %v161_v2 = vpop.f32.mrf.mxu0 }
  0xd9   :  { %v162_v9 = vadd.f32 %v161_v2, %v1013_v4 }
  0xda   :  { %v163_v5 = vpop.f32.mrf.mxu0 }
  0xdb   :  { %v164_v7 = vadd.f32 %v163_v5, %v1009_v3  ;;  %v240_v16 = vmax.f32 %v162_v9, 0.0 }
  0xdc   :  { %v165_v6 = vpop.f32.mrf.mxu0 }
  0xdd   :  { %v166_v8 = vadd.f32 %v165_v6, %v1013_v4  ;;  %v241_v14 = vmax.f32 %v164_v7, 0.0 }
  0xde   :  { %v167_v10 = vpop.f32.mrf.mxu0 }
  0xdf   :  { %v168_v11 = vadd.f32 %v167_v10, %v1009_v3  ;;  %v242_v12 = vmax.f32 %v166_v8, 0.0 }
  0xe0   :  { %v171_v13 = vpop.f32.mrf.mxu0 }
  0xe1   :  { %v243_v15 = vmax.f32 %v168_v11, 0.0  ;;  %v272_v19 = vpack.c.bf16 %v242_v12, %v240_v16  ;;  %v172_v23 = vadd.f32 %v171_v13, %v1013_v4 }
  0xe2   :  { %v173_v17 = vpop.f32.mrf.mxu0 }
  0xe3   :  { %v273_v18 = vpack.c.bf16 %v243_v15, %v241_v14  ;;  %v174_v21 = vadd.f32 %v173_v17, %v1009_v3  ;;  %v244_v30 = vmax.f32 %v172_v23, 0.0 }
  0xe4   :  { %v175_v20 = vpop.f32.mrf.mxu0 }
  0xe5   :  { %v176_v22 = vadd.f32 %v175_v20, %v1013_v4  ;;  %524 = vmatprep.mubr.bf16.mxu1 %v273_v18  ;;  %v245_v28 = vmax.f32 %v174_v21, 0.0 }
  0xe6   :  { %v177_v24 = vpop.f32.mrf.mxu0  ;;  %525 = vmatmul.mubr.bf16.vlgmr.msra.gmra.mxu1 %v272_v19 }
  0xe7   :  { %v178_v25 = vadd.f32 %v177_v24, %v1009_v3  ;;  %v246_v26 = vmax.f32 %v176_v22, 0.0 }
  0xe8   :  { %v181_v27 = vpop.f32.mrf.mxu0 }
  0xe9   :  { %v247_v29 = vmax.f32 %v178_v25, 0.0  ;;  %v274_v33 = vpack.c.bf16 %v246_v26, %v244_v30  ;;  %v182_v37 = vadd.f32 %v181_v27, %v1013_v4 }
  0xea   :  { %v183_v31 = vpop.f32.mrf.mxu0 }
  0xeb   :  { %v275_v32 = vpack.c.bf16 %v247_v29, %v245_v28  ;;  %v184_v35 = vadd.f32 %v183_v31, %v1009_v3  ;;  %v248_v44 = vmax.f32 %v182_v37, 0.0 }
  0xec   :  { %v185_v34 = vpop.f32.mrf.mxu0 }
  0xed   :  { %v186_v36 = vadd.f32 %v185_v34, %v1013_v4  ;;  %534 = vmatprep.mubr.bf16.mxu1 %v275_v32  ;;  %v249_v42 = vmax.f32 %v184_v35, 0.0 }
  0xee   :  { %v187_v38 = vpop.f32.mrf.mxu0  ;;  %535 = vmatmul.mubr.bf16.gmra.mxu1 %v274_v33 }
  0xef   :  { %v188_v39 = vadd.f32 %v187_v38, %v1009_v3  ;;  %v250_v40 = vmax.f32 %v186_v36, 0.0 }
  0xf0   :  { %v191_v41 = vpop.f32.mrf.mxu0 }
  0xf1   :  { %v251_v43 = vmax.f32 %v188_v39, 0.0  ;;  %v276_v47 = vpack.c.bf16 %v250_v40, %v248_v44  ;;  %v192_v51 = vadd.f32 %v191_v41, %v1013_v4 }
  0xf2   :  { %v193_v45 = vpop.f32.mrf.mxu0 }
  0xf3   :  { %v277_v46 = vpack.c.bf16 %v251_v43, %v249_v42  ;;  %v194_v49 = vadd.f32 %v193_v45, %v1009_v3  ;;  %v252_v58 = vmax.f32 %v192_v51, 0.0 }
  0xf4   :  { %v195_v48 = vpop.f32.mrf.mxu0 }
  0xf5   :  { %v196_v50 = vadd.f32 %v195_v48, %v1013_v4  ;;  %544 = vmatprep.mubr.bf16.mxu1 %v277_v46  ;;  %v253_v56 = vmax.f32 %v194_v49, 0.0 }
  0xf6   :  { %v197_v52 = vpop.f32.mrf.mxu0  ;;  %545 = vmatmul.mubr.bf16.gmra.mxu1 %v276_v47 }
  0xf7   :  { %v198_v53 = vadd.f32 %v197_v52, %v1009_v3  ;;  %v254_v54 = vmax.f32 %v196_v50, 0.0 }
  0xf8   :  { %v201_v55 = vpop.f32.mrf.mxu0 }
  0xf9   :  { %v255_v57 = vmax.f32 %v198_v53, 0.0  ;;  %v278_v61 = vpack.c.bf16 %v254_v54, %v252_v58  ;;  %v202_v6 = vadd.f32 %v201_v55, %v1013_v4 }
  0xfa   :  { %v203_v59 = vpop.f32.mrf.mxu0 }
  0xfb   :  { %v279_v60 = vpack.c.bf16 %v255_v57, %v253_v56  ;;  %v204_v2 = vadd.f32 %v203_v59, %v1009_v3  ;;  %v256_v13 = vmax.f32 %v202_v6, 0.0  ;;  %v320_v57 = vld [vmem:[%s1133_s4] sm:$0x3] }
  0xfc   :  { %v205_v1 = vpop.f32.mrf.mxu0 }
  0xfd   :  { %v206_v5 = vadd.f32 %v205_v1, %v1013_v4  ;;  %554 = vmatprep.mubr.bf16.mxu1 %v279_v60  ;;  %v257_v11 = vmax.f32 %v204_v2, 0.0  ;;  %v1063_v60 = vrot.slane %v320_v57, %v78_v63 }
  0xfe   :  { %v207_v7 = vpop.f32.mrf.mxu0  ;;  %555 = vmatmul.mubr.bf16.gmra.mxu1 %v278_v61 }
  0xff   :  { %v208_v8 = vadd.f32 %v207_v7, %v1009_v3  ;;  %v258_v9 = vmax.f32 %v206_v5, 0.0 }
 0x100   :  { %v211_v10 = vpop.f32.mrf.mxu0 }
 0x101   :  { %v259_v12 = vmax.f32 %v208_v8, 0.0  ;;  %v280_v16 = vpack.c.bf16 %v258_v9, %v256_v13  ;;  %v212_v20 = vadd.f32 %v211_v10, %v1013_v4 }
 0x102   :  { %v213_v14 = vpop.f32.mrf.mxu0 }
 0x103   :  { %v281_v15 = vpack.c.bf16 %v259_v12, %v257_v11  ;;  %v214_v18 = vadd.f32 %v213_v14, %v1009_v3  ;;  %v260_v27 = vmax.f32 %v212_v20, 0.0 }
 0x104   :  { %v215_v17 = vpop.f32.mrf.mxu0 }
 0x105   :  { %v216_v19 = vadd.f32 %v215_v17, %v1013_v4  ;;  %564 = vmatprep.mubr.bf16.mxu1 %v281_v15  ;;  %v261_v25 = vmax.f32 %v214_v18, 0.0 }
 0x106   :  { %v217_v21 = vpop.f32.mrf.mxu0  ;;  %565 = vmatmul.mubr.bf16.gmra.mxu1 %v280_v16 }
 0x107   :  { %v218_v22 = vadd.f32 %v217_v21, %v1009_v3  ;;  %v262_v23 = vmax.f32 %v216_v19, 0.0 }
 0x108   :  { %v221_v24 = vpop.f32.mrf.mxu0 }
 0x109   :  { %v263_v26 = vmax.f32 %v218_v22, 0.0  ;;  %v282_v30 = vpack.c.bf16 %v262_v23, %v260_v27  ;;  %v222_v34 = vadd.f32 %v221_v24, %v1013_v4 }
 0x10a   :  { %v223_v28 = vpop.f32.mrf.mxu0 }
 0x10b   :  { %v283_v29 = vpack.c.bf16 %v263_v26, %v261_v25  ;;  %v224_v32 = vadd.f32 %v223_v28, %v1009_v3  ;;  %v264_v41 = vmax.f32 %v222_v34, 0.0 }
 0x10c   :  { %v225_v31 = vpop.f32.mrf.mxu0 }
 0x10d   :  { %v226_v33 = vadd.f32 %v225_v31, %v1013_v4  ;;  %574 = vmatprep.mubr.bf16.mxu1 %v283_v29  ;;  %v265_v39 = vmax.f32 %v224_v32, 0.0 }
 0x10e   :  { %v227_v35 = vpop.f32.mrf.mxu0  ;;  %575 = vmatmul.mubr.bf16.gmra.mxu1 %v282_v30 }
 0x10f   :  { %v228_v36 = vadd.f32 %v227_v35, %v1009_v3  ;;  %v266_v37 = vmax.f32 %v226_v33, 0.0 }
 0x110   :  { %v231_v38 = vpop.f32.mrf.mxu0 }
 0x111   :  { %v267_v40 = vmax.f32 %v228_v36, 0.0  ;;  %v284_v44 = vpack.c.bf16 %v266_v37, %v264_v41  ;;  %v232_v48 = vadd.f32 %v231_v38, %v1013_v4 }
 0x112   :  { %v233_v42 = vpop.f32.mrf.mxu0 }
 0x113   :  { %v285_v43 = vpack.c.bf16 %v267_v40, %v265_v39  ;;  %v234_v46 = vadd.f32 %v233_v42, %v1009_v3  ;;  %v268_v54 = vmax.f32 %v232_v48, 0.0 }
 0x114   :  { %v235_v45 = vpop.f32.mrf.mxu0 }
 0x115   :  { %v236_v47 = vadd.f32 %v235_v45, %v1013_v4  ;;  %584 = vmatprep.mubr.bf16.mxu1 %v285_v43  ;;  %v269_v52 = vmax.f32 %v234_v46, 0.0  ;;  %v1053_v4 = vld [vmem:[%s1134_s5] sm:$0xff] }
 0x116   :  { %v237_v49 = vpop.f32.mrf.mxu0  ;;  %585 = vmatmul.mubr.bf16.gmra.mxu1 %v284_v44  ;;  %v768_v58 = vcombine.high %v1053_v4, %v1053_v4 }
 0x117   :  { %v238_v50 = vadd.f32 %v237_v49, %v1009_v3  ;;  %v270_v51 = vmax.f32 %v236_v47, 0.0  ;;  %v1057_v3 = vrot.slane %v320_v57, %v74_v0  ;;  %v654_v0 = vld [vmem:[%s1135_s6] sm:$0xff]  ;;  %s879_s6 = smov [#allocation5]  }
 0x118   :  { %699 = vmatprep.mubr.bf16.mxu0 %v768_v58  ;;  %657 = vperm.xlu0 %774, %v654_v0   ;;  %s714_s25 = sshll.u32 %s879_s6, 4  ;;  %s715_s25 = int_to_ptr.vmem [resolvable:$true] %s714_s25 }
 0x119   :  { %v271_v53 = vmax.f32 %v238_v50, 0.0  ;;  %v286_v56 = vpack.c.bf16 %v270_v51, %v268_v54  ;;  %s851_s26 = scalar_lea.vmem %s715_s25, 128  ;;  %p856_p6 = scmp.lt.s32.totalorder %s715_s25, %s715_s25 }
 0x11a   :  { %p852_p5 = scmp.ne.s32.totalorder %s715_s25, %s851_s26  ;;  %p857_p7 = scmp.lt.s32.totalorder %s851_s26, %s851_s26 }
 0x11b   :  { %v287_v55 = vpack.c.bf16 %v271_v53, %v269_v52 }
 0x11c   :  { %p858_p8 = por %p857_p7, %p856_p6 }
 0x11d   :  { %594 = vmatprep.mubr.bf16.mxu1 %v287_v55 }
 0x11e   :  { %595 = vmatmul.mubr.bf16.gmra.mxu1 %v286_v56  ;;  %p859_p9 = pnand %p858_p8, %p852_p5 }
 0x1a6   :  { %v526_v59 = vpop.f32.mrf.mxu1 }
 0x1a7   :  { %v527_v1 = vadd.f32 %v526_v59, %v1057_v3 }
 0x1a8   :  { %v528_v61 = vpop.f32.mrf.mxu1 }
 0x1a9   :  { %v529_v5 = vadd.f32 %v528_v61, %v1063_v60  ;;  %v605_v8 = vmax.f32 %v527_v1, 0.0 }
 0x1aa   :  { %v530_v2 = vpop.f32.mrf.mxu1 }
 0x1ab   :  { %v531_v6 = vadd.f32 %v530_v2, %v1057_v3  ;;  %v606_v10 = vmax.f32 %v529_v5, 0.0 }
 0x1ac   :  { %v532_v7 = vpop.f32.mrf.mxu1 }
 0x1ad   :  { %v607_v9 = vmax.f32 %v531_v6, 0.0  ;;  %v533_v62 = vadd.f32 %v532_v7, %v1063_v60 }
 0x1ae   :  { %v536_v63 = vpop.f32.mrf.mxu1 }
 0x1af   :  { %v1072_v11 = vpack.c.bf16 %v607_v9, %v605_v8  ;;  %v608_v12 = vmax.f32 %v533_v62, 0.0  ;;  %v537_v15 = vadd.f32 %v536_v63, %v1057_v3 }
 0x1b0   :  { %v538_v13 = vpop.f32.mrf.mxu1 }
 0x1b1   :  { %v1074_v14 = vpack.c.bf16 %v608_v12, %v606_v10  ;;  %v539_v17 = vadd.f32 %v538_v13, %v1063_v60  ;;  %v609_v20 = vmax.f32 %v537_v15, 0.0 }
 0x1b2   :  { %v540_v16 = vpop.f32.mrf.mxu1 }
 0x1b3   :  { %v541_v18 = vadd.f32 %v540_v16, %v1057_v3  ;;  %v610_v24 = vmax.f32 %v539_v17, 0.0 }
 0x1b4   :  { %v542_v19 = vpop.f32.mrf.mxu1 }
 0x1b5   :  { %v611_v21 = vmax.f32 %v541_v18, 0.0  ;;  %v543_v22 = vadd.f32 %v542_v19, %v1063_v60 }
 0x1b6   :  { %v546_v23 = vpop.f32.mrf.mxu1 }
 0x1b7   :  { %v1080_v25 = vpack.c.bf16 %v611_v21, %v609_v20  ;;  %v612_v26 = vmax.f32 %v543_v22, 0.0  ;;  %v547_v29 = vadd.f32 %v546_v23, %v1057_v3 }
 0x1b8   :  { %v548_v27 = vpop.f32.mrf.mxu1 }
 0x1b9   :  { %v1082_v28 = vpack.c.bf16 %v612_v26, %v610_v24  ;;  %v549_v31 = vadd.f32 %v548_v27, %v1063_v60  ;;  %v613_v34 = vmax.f32 %v547_v29, 0.0 }
 0x1ba   :  { %v550_v30 = vpop.f32.mrf.mxu1 }
 0x1bb   :  { %v551_v32 = vadd.f32 %v550_v30, %v1057_v3  ;;  %v614_v38 = vmax.f32 %v549_v31, 0.0 }
 0x1bc   :  { %v552_v33 = vpop.f32.mrf.mxu1 }
 0x1bd   :  { %v615_v35 = vmax.f32 %v551_v32, 0.0  ;;  %v553_v36 = vadd.f32 %v552_v33, %v1063_v60 }
 0x1be   :  { %v556_v37 = vpop.f32.mrf.mxu1 }
 0x1bf   :  { %v1088_v39 = vpack.c.bf16 %v615_v35, %v613_v34  ;;  %v616_v40 = vmax.f32 %v553_v36, 0.0  ;;  %v557_v43 = vadd.f32 %v556_v37, %v1057_v3 }
 0x1c0   :  { %v1090_v41 = vpop.f32.mrf.mxu1 }
 0x1c1   :  { %v1092_v42 = vpack.c.bf16 %v616_v40, %v614_v38  ;;  %v617_v47 = vmax.f32 %v557_v43, 0.0 }
 0x1c2   :  { %v560_v44 = vpop.f32.mrf.mxu1 }
 0x1c3   :  { %v561_v45 = vadd.f32 %v560_v44, %v1057_v3 }
 0x1c4   :  { %v562_v46 = vpop.f32.mrf.mxu1 }
 0x1c5   :  { %v619_v48 = vmax.f32 %v561_v45, 0.0 }
 0x1c6   :  { %v566_v49 = vpop.f32.mrf.mxu1 }
 0x1c7   :  { %v1096_v50 = vpack.c.bf16 %v619_v48, %v617_v47  ;;  %v563_v48 = vadd.f32 %v562_v46, %v1063_v60 }
 0x1c8   :  { %v568_v51 = vpop.f32.mrf.mxu1 }
 0x1c9   :  { %v569_v37 = vadd.f32 %v568_v51, %v1063_v60  ;;  %v620_v51 = vmax.f32 %v563_v48, 0.0 }
 0x1ca   :  { %v570_v52 = vpop.f32.mrf.mxu1 }
 0x1cb   :  { %v622_v44 = vmax.f32 %v569_v37, 0.0  ;;  %v571_v45 = vadd.f32 %v570_v52, %v1057_v3 }
 0x1cc   :  { %v572_v53 = vpop.f32.mrf.mxu1 }
 0x1cd   :  { %v573_v34 = vadd.f32 %v572_v53, %v1063_v60  ;;  %v559_v53 = vadd.f32 %v1090_v41, %v1063_v60 }
 0x1ce   :  { %v576_v54 = vpop.f32.mrf.mxu1 }
 0x1cf   :  { %v577_v36 = vadd.f32 %v576_v54, %v1057_v3  ;;  %v624_v40 = vmax.f32 %v573_v34, 0.0  ;;  %v623_v54 = vmax.f32 %v571_v45, 0.0 }
 0x1d0   :  { %v578_v55 = vpop.f32.mrf.mxu1 }
 0x1d1   :  { %v579_v26 = vadd.f32 %v578_v55, %v1063_v60  ;;  %v625_v43 = vmax.f32 %v577_v36, 0.0  ;;  %v647_v55 = vpack.c.bf16 %v624_v40, %v622_v44 }
 0x1d2   :  { %v580_v56 = vpop.f32.mrf.mxu1 }
 0x1d3   :  { %v626_v31 = vmax.f32 %v579_v26, 0.0  ;;  %v581_v32 = vadd.f32 %v580_v56, %v1057_v3  ;;  %v567_v56 = vadd.f32 %v566_v49, %v1057_v3 }
 0x1d4   :  { %v582_v57 = vpop.f32.mrf.mxu1 }
 0x1d5   :  { %v583_v22 = vadd.f32 %v582_v57, %v1063_v60  ;;  %v627_v38 = vmax.f32 %v581_v32, 0.0  ;;  %v621_v57 = vmax.f32 %v567_v56, 0.0 }
 0x1d6   :  { %v586_v58 = vpop.f32.mrf.mxu1 }
 0x1d7   :  { %v587_v24 = vadd.f32 %v586_v58, %v1057_v3  ;;  %v628_v29 = vmax.f32 %v583_v22, 0.0  ;;  %v648_v47 = vpack.c.bf16 %v627_v38, %v625_v43  ;;  %v618_v58 = vmax.f32 %v559_v53, 0.0 }
 0x1d8   :  { %v588_v59 = vpop.f32.mrf.mxu1 }
 0x1d9   :  { %v589_v63 = vadd.f32 %v588_v59, %v1063_v60  ;;  %v629_v30 = vmax.f32 %v587_v24, 0.0  ;;  %v649_v35 = vpack.c.bf16 %v628_v29, %v626_v31  ;;  %v646_v59 = vpack.c.bf16 %v623_v54, %v621_v57 }
 0x1da   :  { %v590_v61 = vpop.f32.mrf.mxu1 }
 0x1db   :  { %v630_v18 = vmax.f32 %v589_v63, 0.0  ;;  %v591_v20 = vadd.f32 %v590_v61, %v1057_v3  ;;  %v645_v61 = vpack.c.bf16 %v620_v51, %v618_v58 }
 0x1dc   :  { %v592_v1 = vpop.f32.mrf.mxu1 }
 0x1dd   :  { %v593_v0 = vadd.f32 %v592_v1, %v1063_v60  ;;  %v631_v27 = vmax.f32 %v591_v20, 0.0 }
 0x1de   :  { %v596_v2 = vpop.f32.mrf.mxu1 }
 0x1df   :  { %v597_v9 = vadd.f32 %v596_v2, %v1057_v3  ;;  %v632_v13 = vmax.f32 %v593_v0, 0.0  ;;  %v650_v33 = vpack.c.bf16 %v631_v27, %v629_v30 }
 0x1e0   :  { %v598_v5 = vpop.f32.mrf.mxu1 }
 0x1e1   :  { %v599_v7 = vadd.f32 %v598_v5, %v1063_v60  ;;  %v633_v17 = vmax.f32 %v597_v9, 0.0  ;;  %v651_v23 = vpack.c.bf16 %v632_v13, %v630_v18 }
 0x1e2   :  { %v600_v6 = vpop.f32.mrf.mxu1 }
 0x1e3   :  { %v601_v8 = vadd.f32 %v600_v6, %v1057_v3  ;;  %v634_v15 = vmax.f32 %v599_v7, 0.0  ;;  %v767_v3 = vcombine.low %v1053_v4, %v1053_v4 }
 0x1e4   :  { %v602_v62 = vpop.f32.mrf.mxu1 }
 0x1e5   :  { %v603_v10 = vadd.f32 %v602_v62, %v1063_v60  ;;  %v635_v12 = vmax.f32 %v601_v8, 0.0  ;;  %v658_v60 = vpop.permute.xlu0 %657 }
 0x1e7   :  { %v636_v16 = vmax.f32 %v603_v10, 0.0  ;;  %v652_v21 = vpack.c.bf16 %v635_v12, %v633_v17 }
 0x1e9   :  { %v653_v19 = vpack.c.bf16 %v636_v16, %v634_v15 }
 0x1eb   :  { %667 = vmatprep.subr.bf16.mxu0 %v653_v19 }
 0x1ec   :  { %668 = vmatpush1.bf16.xpose.msra.mxu0 %v652_v21 }
 0x1ed   :  { %669 = vmatprep.subr.bf16.mxu0 %v651_v23 }
 0x1f4   :  { %670 = vmatpush1.bf16.xpose.msra.mxu0 %v650_v33 }
 0x1f5   :  { %671 = vmatprep.subr.bf16.mxu0 %v649_v35 }
 0x1fc   :  { %672 = vmatpush1.bf16.xpose.msra.mxu0 %v648_v47 }
 0x1fd   :  { %673 = vmatprep.subr.bf16.mxu0 %v647_v55 }
 0x204   :  { %674 = vmatpush1.bf16.xpose.msra.mxu0 %v646_v59 }
 0x205   :  { %675 = vmatprep.subr.bf16.mxu0 %v645_v61 }
 0x20c   :  { %676 = vmatpush1.bf16.xpose.msra.mxu0 %v1096_v50 }
 0x20d   :  { %677 = vmatprep.subr.bf16.mxu0 %v1092_v42 }
 0x214   :  { %678 = vmatpush1.bf16.xpose.msra.mxu0 %v1088_v39 }
 0x215   :  { %679 = vmatprep.subr.bf16.mxu0 %v1082_v28 }
 0x21c   :  { %680 = vmatpush1.bf16.xpose.msra.mxu0 %v1080_v25 }
 0x21d   :  { %681 = vmatprep.subr.bf16.mxu0 %v1074_v14 }
 0x224   :  { %682 = vmatpush1.bf16.xpose.msra.mxu0 %v1072_v11 }
 0x22b   :  { %700 = vmatmul.mubr.bf16.vlgmr.msra.gmra.mxu0 %v767_v3 }
 0x2eb   :  { %v701_v41 = vpop.f32.mrf.mxu0 }
 0x2ec   :  { %v702_v46 = vadd.f32 %v701_v41, %v658_v60 }
 0x2ed   :  { %v703_v42 = vpop.f32.mrf.mxu0 }
 0x2ee   :  { %707 = vst [vmem:[#allocation5] sm:$0xff] %v702_v46 }
 0x2ef   :  { %v704_v39 = vpop.f32.mrf.mxu0 }
 0x2f0   :  { %862 = shalt.err (!%p859_p9)
}
 0x2f1   :  { %717 = dma.vmem_to_hbm [thread:$0]  %s715_s25, 128, %s1136_s7, [#allocation4]   ;;  %v705_v4 = vpop.f32.mrf.mxu0 }
 0x2f2   :  { %873 = dma.done.wait [#allocation4], 128  }
 0x2f3   :  { %874 = vsyncadd [#allocation4], 4294967168 }
 0x2f4   :  { %721 = vsyncpa [#allocation3], 1 }
 0x2f5   :  { %722 = vsyncpa [#allocation4], 1 }

</bundles_post_ra>
